<compile_context>
chip_gen: v7x
topology: tpu7x:2x2x1
jax: 0.10.0
libtpu: 0.0.40
codegen_flags: <defaults>
</compile_context>

<pallas_src>
import functools

import jax
import jax.numpy as jnp
from jax.experimental import pallas as pl
from jax.experimental.pallas import tpu as pltpu


_MXU_MIN_K = 16   # K cutoff below which the 1x1 convs run as unrolled VPU FMAs.
_HALO = 128       # lane-aligned halo pad around the flattened depthwise image.


# ----------------------------- fused Pallas kernel ------------------------------

def _small_k_matmul(a, b):
    """(m, k) @ (k, n).  Tiny K -> unrolled VPU broadcast-FMA (outer products)
    so we do not feed the MXU a K of 4/8; larger K uses the MXU."""
    k = a.shape[1]
    if k >= _MXU_MIN_K:
        return jnp.dot(a, b, preferred_element_type=jnp.float32)
    acc = a[:, 0:1] * b[0:1, :]
    for kk in range(1, k):
        acc = acc + a[:, kk:kk + 1] * b[kk:kk + 1, :]
    return acc


def _bottleneck_kernel(x_ref, w1_ref, b1_ref, a1_ref, wdw_ref, b2_ref, a2_ref,
                       w3_ref, b3_ref, *rest, H, W, stride, connect, nb, dw_bf16):
    # rest = (sel_ref?, o_ref, zp_scratch)
    if stride > 1:
        sel_ref, o_ref, zp_ref = rest
    else:
        o_ref, zp_ref = rest
        sel_ref = None

    HW = H * W
    dw_dtype = zp_ref.dtype
    hid = zp_ref.shape[0]

    # (1) zero only the two halo strips; the data region [128, 128+HW) is fully
    # overwritten by y1 for every image.  Every-step zeroing keeps this correct
    # under megacore splitting of the "parallel" batch axis.
    halo_zeros = jnp.zeros((hid, _HALO), dw_dtype)
    zp_ref[:, pl.ds(0, _HALO)] = halo_zeros
    zp_ref[:, pl.ds(_HALO + HW, _HALO)] = halo_zeros

    # (3) column-only border masks; row borders are covered by the zero halo.
    lane = jax.lax.broadcasted_iota(jnp.int32, (1, HW), 1)
    j_idx = lane % W
    col_lo = (j_idx >= 1).astype(dw_dtype)        # zero kw=0 taps at j == 0
    col_hi = (j_idx <= W - 2).astype(dw_dtype)    # zero kw=2 taps at j == W-1

    wdw = wdw_ref[...]                            # (hid, 9), dw_dtype

    for b in range(nb):
        x = x_ref[b]                              # (Cin, HW) f32
        x_c = x.astype(dw_dtype) if dw_bf16 else x

        # ---- stage 1: 1x1 expand (BN1 scale folded) + shift + PReLU ----
        y1 = _small_k_matmul(w1_ref[...], x_c) + b1_ref[...]     # (hid, HW) f32
        y1 = jnp.where(y1 >= 0.0, y1, a1_ref[...] * y1)

        # ---- stage 2: depthwise 3x3 (BN2 scale folded) ----
        # (2) lane-aligned store of the image into the haloed scratch.
        zp_ref[:, pl.ds(_HALO, HW)] = y1.astype(dw_dtype)

        acc = None                                # f32 accumulator
        for kw in range(3):
            grp = None
            for kh in range(3):
                d = (kh - 1) * W + (kw - 1)       # static lane shift
                patch = zp_ref[:, pl.ds(_HALO + d, HW)]
                term = patch * wdw[:, kh * 3 + kw:kh * 3 + kw + 1]
                grp = term if grp is None else grp + term
            if kw == 0:
                grp = grp * col_lo
            elif kw == 2:
                grp = grp * col_hi
            grp = grp.astype(jnp.float32)
            acc = grp if acc is None else acc + grp

        # stride>1: gather strided output positions (padded to 128-lane width)
        # via a 0/1 matmul on the otherwise-idle MXU, all in VMEM.
        if sel_ref is not None:
            a_sel = acc.astype(dw_dtype) if dw_bf16 else acc
            acc = jnp.dot(a_sel, sel_ref[...], preferred_element_type=jnp.float32)

        z2 = acc + b2_ref[...]
        z2 = jnp.where(z2 >= 0.0, z2, a2_ref[...] * z2)

        # ---- stage 3: 1x1 project (BN3 scale folded) + shift (+ residual) ----
        z2_c = z2.astype(dw_dtype) if dw_bf16 else z2
        out = _small_k_matmul(w3_ref[...], z2_c) + b3_ref[...]
        if connect:
            out = out + x                         # residual in f32
        o_ref[b] = out.astype(o_ref.dtype)        # (4) full-width lane-dense store


# ----------------------------- host wrapper ------------------------------

def _fold_bn(bn, eps=1e-5):
    scale = bn["gamma"] / jnp.sqrt(bn["var"] + eps)
    shift = bn["beta"] - bn["mean"] * scale
    return scale, shift


def bottleneck_forward(params, x_nchw, stride, *, nb=1, dw_bf16=False):
    """Fused Pallas implementation of Bottleneck.forward.  x_nchw: (N, Cin, H, W)."""
    N, Cin, H, W = x_nchw.shape
    hid = params["w1"].shape[0]
    oup = params["w3"].shape[0]
    connect = (stride == 1) and (Cin == oup)
    assert N % nb == 0, "nb must divide the batch size"

    HW = H * W
    Ho = (H + 2 - 3) // stride + 1
    Wo = (W + 2 - 3) // stride + 1
    HWo = Ho * Wo
    # (4) pad the strided output width to a multiple of 128 lanes; host slices.
    hwo_pad = HWo if stride == 1 else ((HWo + 127) // 128) * 128

    dw_dtype = jnp.bfloat16 if dw_bf16 else jnp.float32

    # fold eval-mode BN scales into the conv weights (trace-time)
    s1, b1 = _fold_bn(params["bn1"])
    s2, b2 = _fold_bn(params["bn2"])
    s3, b3 = _fold_bn(params["bn3"])
    w1f = (params["w1"][:, :, 0, 0] * s1[:, None]).astype(dw_dtype)              # (hid, Cin)
    wdwf = (params["w_dw"][:, 0].reshape(hid, 9) * s2[:, None]).astype(dw_dtype)  # (hid, 9)
    w3f = (params["w3"][:, :, 0, 0] * s3[:, None]).astype(dw_dtype)              # (oup, hid)

    col = lambda v: v.reshape(-1, 1).astype(jnp.float32)
    x = x_nchw.astype(jnp.float32).reshape(N, Cin, HW)        # free reshape, stays NCHW

    def full(shape):
        return pl.BlockSpec(shape, lambda n, _s=shape: (0,) * len(_s))

    inputs = [x, w1f, col(b1), col(params["prelu1"]), wdwf, col(b2),
              col(params["prelu2"]), w3f, col(b3)]
    in_specs = [
        pl.BlockSpec((nb, Cin, HW), lambda n: (n, 0, 0)),
        full((hid, Cin)), full((hid, 1)), full((hid, 1)),
        full((hid, 9)), full((hid, 1)), full((hid, 1)),
        full((oup, hid)), full((oup, 1)),
    ]
    if stride > 1:
        # 0/1 selection matrix mapping stride-1 flat positions -> strided outputs,
        # padded with all-zero columns up to hwo_pad for lane-dense stores.
        rows = (jnp.arange(Ho) * stride)[:, None] * W + (jnp.arange(Wo) * stride)[None, :]
        sel = jax.nn.one_hot(rows.reshape(-1), HW, dtype=jnp.float32).T          # (HW, HWo)
        sel = jnp.zeros((HW, hwo_pad), jnp.float32).at[:, :HWo].set(sel).astype(dw_dtype)
        inputs.append(sel)
        in_specs.append(full((HW, hwo_pad)))

    kernel = functools.partial(_bottleneck_kernel, H=H, W=W, stride=stride,
                               connect=connect, nb=nb, dw_bf16=dw_bf16)
    # NOTE: at real MobileFaceNet shapes add an H-tile grid axis (halo'd index_map)
    # and set vmem_limit_bytes for v7x's 64 MiB VMEM; unnecessary at these shapes.
    out = pl.pallas_call(
        kernel,
        out_shape=jax.ShapeDtypeStruct((N, oup, hwo_pad), jnp.float32),
        grid=(N // nb,),
        in_specs=in_specs,
        out_specs=pl.BlockSpec((nb, oup, hwo_pad), lambda n: (n, 0, 0)),
        scratch_shapes=[pltpu.VMEM((hid, _HALO + HW + _HALO), dw_dtype)],
        compiler_params=pltpu.CompilerParams(dimension_semantics=("parallel",)),
    )(*inputs)
    return out[:, :, :HWo].reshape(N, oup, Ho, Wo)            # already NCHW


# ----------------------------- parameter init ------------------------------

def init_bottleneck_params(key, inp, oup, expansion):
    hid = inp * expansion
    ks = jax.random.split(key, 16)

    def bn(k, c):
        k1, k2, k3, k4 = jax.random.split(k, 4)
        return {
            "gamma": 1.0 + 0.1 * jax.random.normal(k1, (c,), jnp.float32),
            "beta": 0.1 * jax.random.normal(k2, (c,), jnp.float32),
            "mean": 0.1 * jax.random.normal(k3, (c,), jnp.float32),
            "var": 1.0 + jnp.abs(jax.random.normal(k4, (c,), jnp.float32)),
        }

    return {
        "w1": 0.1 * jax.random.normal(ks[0], (hid, inp, 1, 1), jnp.float32),   # OIHW
        "bn1": bn(ks[1], hid),
        "prelu1": jax.random.uniform(ks[2], (hid,), jnp.float32, 0.1, 0.4),
        "w_dw": 0.1 * jax.random.normal(ks[3], (hid, 1, 3, 3), jnp.float32),   # OIHW, groups=hid
        "bn2": bn(ks[4], hid),
        "prelu2": jax.random.uniform(ks[5], (hid,), jnp.float32, 0.1, 0.4),
        "w3": 0.1 * jax.random.normal(ks[6], (oup, hid, 1, 1), jnp.float32),   # OIHW
        "bn3": bn(ks[7], oup),
    }


# ----------------------------- pure-JAX reference ------------------------------

def bottleneck_reference(params, x, stride, eps=1e-5):
    dn = ("NCHW", "OIHW", "NCHW")

    def bn(y, p):
        rs = lambda v: v[None, :, None, None]
        return (y - rs(p["mean"])) / jnp.sqrt(rs(p["var"]) + eps) * rs(p["gamma"]) + rs(p["beta"])

    def prelu(y, a):
        return jnp.where(y >= 0, y, a[None, :, None, None] * y)

    hid = params["w1"].shape[0]
    oup = params["w3"].shape[0]
    connect = (stride == 1) and (x.shape[1] == oup)

    y = jax.lax.conv_general_dilated(x, params["w1"], (1, 1), "VALID", dimension_numbers=dn)
    y = prelu(bn(y, params["bn1"]), params["prelu1"])
    y = jax.lax.conv_general_dilated(y, params["w_dw"], (stride, stride),
                                     ((1, 1), (1, 1)), feature_group_count=hid,
                                     dimension_numbers=dn)
    y = prelu(bn(y, params["bn2"]), params["prelu2"])
    y = jax.lax.conv_general_dilated(y, params["w3"], (1, 1), "VALID", dimension_numbers=dn)
    y = bn(y, params["bn3"])
    return x + y if connect else y


# ----------------------------- main ------------------------------

if __name__ == "__main__":
    key = jax.random.PRNGKey(0)
    kx1, kx2, kp1, kp2 = jax.random.split(key, 4)

    fwd = jax.jit(bottleneck_forward, static_argnums=(2,),
                  static_argnames=("nb", "dw_bf16"))

    # config 1: residual-connect path (stride=1, inp == oup)
    inp, oup, stride, expansion = 4, 4, 1, 2
    x1 = jax.random.normal(kx1, (2, inp, 16, 16), jnp.float32)
    p1 = init_bottleneck_params(kp1, inp, oup, expansion)
    ref1 = bottleneck_reference(p1, x1, stride)
    out1 = jax.block_until_ready(fwd(p1, x1, stride, nb=1, dw_bf16=False))
    assert out1.shape == ref1.shape
    assert jnp.allclose(out1, ref1, atol=1e-4, rtol=1e-4), "connect path mismatch"

    # config 1, two images per grid step (step-overhead amortization path)
    out1b = jax.block_until_ready(fwd(p1, x1, stride, nb=2, dw_bf16=False))
    assert jnp.allclose(out1b, ref1, atol=1e-4, rtol=1e-4), "nb=2 path mismatch"

    # config 2: no-connect path (stride=2, inp != oup), lane-padded output
    inp, oup, stride, expansion = 4, 8, 2, 2
    x2 = jax.random.normal(kx2, (2, inp, 16, 16), jnp.float32)
    p2 = init_bottleneck_params(kp2, inp, oup, expansion)
    ref2 = bottleneck_reference(p2, x2, stride)
    out2 = jax.block_until_ready(fwd(p2, x2, stride, nb=1, dw_bf16=False))
    assert out2.shape == ref2.shape == (2, oup, 8, 8)
    assert jnp.allclose(out2, ref2, atol=1e-4, rtol=1e-4), "strided path mismatch"

    # config 2 with the bf16 depthwise / bf16-MXU-operand path (v6e/v7x option)
    out3 = jax.block_until_ready(fwd(p2, x2, stride, nb=1, dw_bf16=True))
    assert out3.shape == ref2.shape
    assert jnp.allclose(out3, ref2, atol=1e-1, rtol=1e-1), "bf16 path mismatch"

    print("KERNEL_OK")
</pallas_src>

<mosaic_0001>
module attributes {stable_mosaic.version = 11 : i64} {
  func.func @_bottleneck_kernel(%arg0: i32, %arg1: memref<1x4x256xf32, #tpu.memory_space<vmem>>, %arg2: memref<8x4xf32, #tpu.memory_space<vmem>>, %arg3: memref<8x1xf32, #tpu.memory_space<vmem>>, %arg4: memref<8x1xf32, #tpu.memory_space<vmem>>, %arg5: memref<8x9xf32, #tpu.memory_space<vmem>>, %arg6: memref<8x1xf32, #tpu.memory_space<vmem>>, %arg7: memref<8x1xf32, #tpu.memory_space<vmem>>, %arg8: memref<4x8xf32, #tpu.memory_space<vmem>>, %arg9: memref<4x1xf32, #tpu.memory_space<vmem>>, %arg10: memref<1x4x256xf32, #tpu.memory_space<vmem>>, %arg11: memref<8x512xf32, #tpu.memory_space<vmem>>) attributes {dimension_semantics = [#tpu.dimension_semantics<parallel>], iteration_bounds = array<i64: 2>, scalar_prefetch = 0 : i64, scratch_operands = 1 : i64, tpu.core_type = #tpu.core_type<tc>, window_params = [{transform_indices = @transform_0, window_bounds = array<i64: 1, 4, 256>}, {pipeline_mode = #tpu.pipeline_mode<synchronous>, transform_indices = @transform_1, window_bounds = array<i64: 8, 4>}, {pipeline_mode = #tpu.pipeline_mode<synchronous>, transform_indices = @transform_2, window_bounds = array<i64: 8, 1>}, {pipeline_mode = #tpu.pipeline_mode<synchronous>, transform_indices = @transform_3, window_bounds = array<i64: 8, 1>}, {pipeline_mode = #tpu.pipeline_mode<synchronous>, transform_indices = @transform_4, window_bounds = array<i64: 8, 9>}, {pipeline_mode = #tpu.pipeline_mode<synchronous>, transform_indices = @transform_5, window_bounds = array<i64: 8, 1>}, {pipeline_mode = #tpu.pipeline_mode<synchronous>, transform_indices = @transform_6, window_bounds = array<i64: 8, 1>}, {pipeline_mode = #tpu.pipeline_mode<synchronous>, transform_indices = @transform_7, window_bounds = array<i64: 4, 8>}, {pipeline_mode = #tpu.pipeline_mode<synchronous>, transform_indices = @transform_8, window_bounds = array<i64: 4, 1>}, {transform_indices = @transform_9, window_bounds = array<i64: 1, 4, 256>}]} {
    %cst = arith.constant 0.000000e+00 : f32
    %0 = vector.broadcast %cst : f32 to vector<8x128xf32>
    %c0 = arith.constant 0 : index
    %c0_0 = arith.constant 0 : index
    %1 = vector.load %arg11[%c0, %c0_0] : memref<8x512xf32, #tpu.memory_space<vmem>>, vector<8x128xf32>
    tpu.vector_store %arg11[%c0, %c0_0], %0 {strides = array<i32>} : memref<8x512xf32, #tpu.memory_space<vmem>>, vector<8x128xf32>,
    %c0_1 = arith.constant 0 : index
    %c384 = arith.constant 384 : index
    %2 = vector.load %arg11[%c0_1, %c384] : memref<8x512xf32, #tpu.memory_space<vmem>>, vector<8x128xf32>
    tpu.vector_store %arg11[%c0_1, %c384], %0 {strides = array<i32>} : memref<8x512xf32, #tpu.memory_space<vmem>>, vector<8x128xf32>,
    %3 = tpu.iota {dimensions = array<i32: 1>} : vector<1x256xi32>
    %c16_i32 = arith.constant 16 : i32
    %c0_i32 = arith.constant 0 : i32
    %4 = arith.cmpi eq, %c16_i32, %c0_i32 : i32
    %c1_i32 = arith.constant 1 : i32
    %5 = arith.select %4, %c1_i32, %c16_i32 : i32
    %6 = vector.broadcast %5 : i32 to vector<1x256xi32>
    %7 = arith.remsi %3, %6 : vector<1x256xi32>
    %c0_i32_2 = arith.constant 0 : i32
    %8 = vector.broadcast %c0_i32_2 : i32 to vector<1x256xi32>
    %9 = arith.cmpi ne, %7, %8 : vector<1x256xi32>
    %c0_i32_3 = arith.constant 0 : i32
    %10 = vector.broadcast %c0_i32_3 : i32 to vector<1x256xi32>
    %11 = arith.cmpi slt, %7, %10 : vector<1x256xi32>
    %c0_i32_4 = arith.constant 0 : i32
    %12 = arith.cmpi slt, %5, %c0_i32_4 : i32
    %13 = vector.broadcast %12 : i1 to vector<1x256xi1>
    %14 = vector.broadcast %13 : vector<1x256xi1> to vector<1x256xi1>
    %15 = arith.xori %11, %14 : vector<1x256xi1>
    %16 = arith.andi %15, %9 : vector<1x256xi1>
    %17 = vector.broadcast %5 : i32 to vector<1x256xi32>
    %18 = arith.addi %7, %17 : vector<1x256xi32>
    %19 = arith.select %16, %18, %7 : vector<1x256xi1>, vector<1x256xi32>
    %c1_i32_5 = arith.constant 1 : i32
    %20 = vector.broadcast %c1_i32_5 : i32 to vector<1x256xi32>
    %21 = arith.cmpi sge, %19, %20 : vector<1x256xi32>
    %22 = arith.extui %21 : vector<1x256xi1> to vector<1x256xi32>
    %23 = arith.sitofp %22 : vector<1x256xi32> to vector<1x256xf32>
    %c14_i32 = arith.constant 14 : i32
    %24 = vector.broadcast %c14_i32 : i32 to vector<1x256xi32>
    %25 = arith.cmpi sle, %19, %24 : vector<1x256xi32>
    %26 = arith.extui %25 : vector<1x256xi1> to vector<1x256xi32>
    %27 = arith.sitofp %26 : vector<1x256xi32> to vector<1x256xf32>
    %c0_6 = arith.constant 0 : index
    %c0_7 = arith.constant 0 : index
    %28 = vector.load %arg5[%c0_6, %c0_7] : memref<8x9xf32, #tpu.memory_space<vmem>>, vector<8x9xf32>
    %c0_8 = arith.constant 0 : index
    %c0_9 = arith.constant 0 : index
    %c0_10 = arith.constant 0 : index
    %29 = vector.load %arg1[%c0_8, %c0_9, %c0_10] : memref<1x4x256xf32, #tpu.memory_space<vmem>>, vector<1x4x256xf32>
    %30 = vector.shape_cast %29 : vector<1x4x256xf32> to vector<4x256xf32>
    %c0_11 = arith.constant 0 : index
    %c0_12 = arith.constant 0 : index
    %31 = vector.load %arg2[%c0_11, %c0_12] : memref<8x4xf32, #tpu.memory_space<vmem>>, vector<8x4xf32>
    %32 = vector.extract_strided_slice %31 {offsets = [0, 0], sizes = [8, 1], strides = [1, 1]} : vector<8x4xf32> to vector<8x1xf32>
    %33 = vector.extract_strided_slice %30 {offsets = [0, 0], sizes = [1, 256], strides = [1, 1]} : vector<4x256xf32> to vector<1x256xf32>
    %34 = vector.broadcast %32 : vector<8x1xf32> to vector<8x256xf32>
    %35 = vector.broadcast %33 : vector<1x256xf32> to vector<8x256xf32>
    %36 = arith.mulf %34, %35 : vector<8x256xf32>
    %37 = vector.extract_strided_slice %31 {offsets = [0, 1], sizes = [8, 1], strides = [1, 1]} : vector<8x4xf32> to vector<8x1xf32>
    %38 = vector.extract_strided_slice %30 {offsets = [1, 0], sizes = [1, 256], strides = [1, 1]} : vector<4x256xf32> to vector<1x256xf32>
    %39 = vector.broadcast %37 : vector<8x1xf32> to vector<8x256xf32>
    %40 = vector.broadcast %38 : vector<1x256xf32> to vector<8x256xf32>
    %41 = arith.mulf %39, %40 : vector<8x256xf32>
    %42 = arith.addf %36, %41 : vector<8x256xf32>
    %43 = vector.extract_strided_slice %31 {offsets = [0, 2], sizes = [8, 1], strides = [1, 1]} : vector<8x4xf32> to vector<8x1xf32>
    %44 = vector.extract_strided_slice %30 {offsets = [2, 0], sizes = [1, 256], strides = [1, 1]} : vector<4x256xf32> to vector<1x256xf32>
    %45 = vector.broadcast %43 : vector<8x1xf32> to vector<8x256xf32>
    %46 = vector.broadcast %44 : vector<1x256xf32> to vector<8x256xf32>
    %47 = arith.mulf %45, %46 : vector<8x256xf32>
    %48 = arith.addf %42, %47 : vector<8x256xf32>
    %49 = vector.extract_strided_slice %31 {offsets = [0, 3], sizes = [8, 1], strides = [1, 1]} : vector<8x4xf32> to vector<8x1xf32>
    %50 = vector.extract_strided_slice %30 {offsets = [3, 0], sizes = [1, 256], strides = [1, 1]} : vector<4x256xf32> to vector<1x256xf32>
    %51 = vector.broadcast %49 : vector<8x1xf32> to vector<8x256xf32>
    %52 = vector.broadcast %50 : vector<1x256xf32> to vector<8x256xf32>
    %53 = arith.mulf %51, %52 : vector<8x256xf32>
    %54 = arith.addf %48, %53 : vector<8x256xf32>
    %c0_13 = arith.constant 0 : index
    %c0_14 = arith.constant 0 : index
    %55 = vector.load %arg3[%c0_13, %c0_14] : memref<8x1xf32, #tpu.memory_space<vmem>>, vector<8x1xf32>
    %56 = vector.broadcast %55 : vector<8x1xf32> to vector<8x256xf32>
    %57 = arith.addf %54, %56 : vector<8x256xf32>
    %cst_15 = arith.constant 0.000000e+00 : f32
    %58 = vector.broadcast %cst_15 : f32 to vector<8x256xf32>
    %59 = arith.cmpf oge, %57, %58 : vector<8x256xf32>
    %c0_16 = arith.constant 0 : index
    %c0_17 = arith.constant 0 : index
    %60 = vector.load %arg4[%c0_16, %c0_17] : memref<8x1xf32, #tpu.memory_space<vmem>>, vector<8x1xf32>
    %61 = vector.broadcast %60 : vector<8x1xf32> to vector<8x256xf32>
    %62 = arith.mulf %61, %57 : vector<8x256xf32>
    %63 = arith.select %59, %57, %62 : vector<8x256xi1>, vector<8x256xf32>
    %c0_18 = arith.constant 0 : index
    %c128 = arith.constant 128 : index
    %64 = vector.load %arg11[%c0_18, %c128] : memref<8x512xf32, #tpu.memory_space<vmem>>, vector<8x256xf32>
    tpu.vector_store %arg11[%c0_18, %c128], %63 {strides = array<i32>} : memref<8x512xf32, #tpu.memory_space<vmem>>, vector<8x256xf32>,
    %c0_19 = arith.constant 0 : index
    %c111 = arith.constant 111 : index
    %65 = vector.load %arg11[%c0_19, %c111] : memref<8x512xf32, #tpu.memory_space<vmem>>, vector<8x256xf32>
    %66 = vector.extract_strided_slice %28 {offsets = [0, 0], sizes = [8, 1], strides = [1, 1]} : vector<8x9xf32> to vector<8x1xf32>
    %67 = vector.broadcast %66 : vector<8x1xf32> to vector<8x256xf32>
    %68 = arith.mulf %65, %67 : vector<8x256xf32>
    %c0_20 = arith.constant 0 : index
    %c127 = arith.constant 127 : index
    %69 = vector.load %arg11[%c0_20, %c127] : memref<8x512xf32, #tpu.memory_space<vmem>>, vector<8x256xf32>
    %70 = vector.extract_strided_slice %28 {offsets = [0, 3], sizes = [8, 1], strides = [1, 1]} : vector<8x9xf32> to vector<8x1xf32>
    %71 = vector.broadcast %70 : vector<8x1xf32> to vector<8x256xf32>
    %72 = arith.mulf %69, %71 : vector<8x256xf32>
    %73 = arith.addf %68, %72 : vector<8x256xf32>
    %c0_21 = arith.constant 0 : index
    %c143 = arith.constant 143 : index
    %74 = vector.load %arg11[%c0_21, %c143] : memref<8x512xf32, #tpu.memory_space<vmem>>, vector<8x256xf32>
    %75 = vector.extract_strided_slice %28 {offsets = [0, 6], sizes = [8, 1], strides = [1, 1]} : vector<8x9xf32> to vector<8x1xf32>
    %76 = vector.broadcast %75 : vector<8x1xf32> to vector<8x256xf32>
    %77 = arith.mulf %74, %76 : vector<8x256xf32>
    %78 = arith.addf %73, %77 : vector<8x256xf32>
    %79 = vector.broadcast %23 : vector<1x256xf32> to vector<8x256xf32>
    %80 = arith.mulf %78, %79 : vector<8x256xf32>
    %c0_22 = arith.constant 0 : index
    %c112 = arith.constant 112 : index
    %81 = vector.load %arg11[%c0_22, %c112] : memref<8x512xf32, #tpu.memory_space<vmem>>, vector<8x256xf32>
    %82 = vector.extract_strided_slice %28 {offsets = [0, 1], sizes = [8, 1], strides = [1, 1]} : vector<8x9xf32> to vector<8x1xf32>
    %83 = vector.broadcast %82 : vector<8x1xf32> to vector<8x256xf32>
    %84 = arith.mulf %81, %83 : vector<8x256xf32>
    %c0_23 = arith.constant 0 : index
    %c128_24 = arith.constant 128 : index
    %85 = vector.load %arg11[%c0_23, %c128_24] : memref<8x512xf32, #tpu.memory_space<vmem>>, vector<8x256xf32>
    %86 = vector.extract_strided_slice %28 {offsets = [0, 4], sizes = [8, 1], strides = [1, 1]} : vector<8x9xf32> to vector<8x1xf32>
    %87 = vector.broadcast %86 : vector<8x1xf32> to vector<8x256xf32>
    %88 = arith.mulf %85, %87 : vector<8x256xf32>
    %89 = arith.addf %84, %88 : vector<8x256xf32>
    %c0_25 = arith.constant 0 : index
    %c144 = arith.constant 144 : index
    %90 = vector.load %arg11[%c0_25, %c144] : memref<8x512xf32, #tpu.memory_space<vmem>>, vector<8x256xf32>
    %91 = vector.extract_strided_slice %28 {offsets = [0, 7], sizes = [8, 1], strides = [1, 1]} : vector<8x9xf32> to vector<8x1xf32>
    %92 = vector.broadcast %91 : vector<8x1xf32> to vector<8x256xf32>
    %93 = arith.mulf %90, %92 : vector<8x256xf32>
    %94 = arith.addf %89, %93 : vector<8x256xf32>
    %95 = arith.addf %80, %94 : vector<8x256xf32>
    %c0_26 = arith.constant 0 : index
    %c113 = arith.constant 113 : index
    %96 = vector.load %arg11[%c0_26, %c113] : memref<8x512xf32, #tpu.memory_space<vmem>>, vector<8x256xf32>
    %97 = vector.extract_strided_slice %28 {offsets = [0, 2], sizes = [8, 1], strides = [1, 1]} : vector<8x9xf32> to vector<8x1xf32>
    %98 = vector.broadcast %97 : vector<8x1xf32> to vector<8x256xf32>
    %99 = arith.mulf %96, %98 : vector<8x256xf32>
    %c0_27 = arith.constant 0 : index
    %c129 = arith.constant 129 : index
    %100 = vector.load %arg11[%c0_27, %c129] : memref<8x512xf32, #tpu.memory_space<vmem>>, vector<8x256xf32>
    %101 = vector.extract_strided_slice %28 {offsets = [0, 5], sizes = [8, 1], strides = [1, 1]} : vector<8x9xf32> to vector<8x1xf32>
    %102 = vector.broadcast %101 : vector<8x1xf32> to vector<8x256xf32>
    %103 = arith.mulf %100, %102 : vector<8x256xf32>
    %104 = arith.addf %99, %103 : vector<8x256xf32>
    %c0_28 = arith.constant 0 : index
    %c145 = arith.constant 145 : index
    %105 = vector.load %arg11[%c0_28, %c145] : memref<8x512xf32, #tpu.memory_space<vmem>>, vector<8x256xf32>
    %106 = vector.extract_strided_slice %28 {offsets = [0, 8], sizes = [8, 1], strides = [1, 1]} : vector<8x9xf32> to vector<8x1xf32>
    %107 = vector.broadcast %106 : vector<8x1xf32> to vector<8x256xf32>
    %108 = arith.mulf %105, %107 : vector<8x256xf32>
    %109 = arith.addf %104, %108 : vector<8x256xf32>
    %110 = vector.broadcast %27 : vector<1x256xf32> to vector<8x256xf32>
    %111 = arith.mulf %109, %110 : vector<8x256xf32>
    %112 = arith.addf %95, %111 : vector<8x256xf32>
    %c0_29 = arith.constant 0 : index
    %c0_30 = arith.constant 0 : index
    %113 = vector.load %arg6[%c0_29, %c0_30] : memref<8x1xf32, #tpu.memory_space<vmem>>, vector<8x1xf32>
    %114 = vector.broadcast %113 : vector<8x1xf32> to vector<8x256xf32>
    %115 = arith.addf %112, %114 : vector<8x256xf32>
    %cst_31 = arith.constant 0.000000e+00 : f32
    %116 = vector.broadcast %cst_31 : f32 to vector<8x256xf32>
    %117 = arith.cmpf oge, %115, %116 : vector<8x256xf32>
    %c0_32 = arith.constant 0 : index
    %c0_33 = arith.constant 0 : index
    %118 = vector.load %arg7[%c0_32, %c0_33] : memref<8x1xf32, #tpu.memory_space<vmem>>, vector<8x1xf32>
    %119 = vector.broadcast %118 : vector<8x1xf32> to vector<8x256xf32>
    %120 = arith.mulf %119, %115 : vector<8x256xf32>
    %121 = arith.select %117, %115, %120 : vector<8x256xi1>, vector<8x256xf32>
    %c0_34 = arith.constant 0 : index
    %c0_35 = arith.constant 0 : index
    %122 = vector.load %arg8[%c0_34, %c0_35] : memref<4x8xf32, #tpu.memory_space<vmem>>, vector<4x8xf32>
    %123 = vector.extract_strided_slice %122 {offsets = [0, 0], sizes = [4, 1], strides = [1, 1]} : vector<4x8xf32> to vector<4x1xf32>
    %124 = vector.extract_strided_slice %121 {offsets = [0, 0], sizes = [1, 256], strides = [1, 1]} : vector<8x256xf32> to vector<1x256xf32>
    %125 = vector.broadcast %123 : vector<4x1xf32> to vector<4x256xf32>
    %126 = vector.broadcast %124 : vector<1x256xf32> to vector<4x256xf32>
    %127 = arith.mulf %125, %126 : vector<4x256xf32>
    %128 = vector.extract_strided_slice %122 {offsets = [0, 1], sizes = [4, 1], strides = [1, 1]} : vector<4x8xf32> to vector<4x1xf32>
    %129 = vector.extract_strided_slice %121 {offsets = [1, 0], sizes = [1, 256], strides = [1, 1]} : vector<8x256xf32> to vector<1x256xf32>
    %130 = vector.broadcast %128 : vector<4x1xf32> to vector<4x256xf32>
    %131 = vector.broadcast %129 : vector<1x256xf32> to vector<4x256xf32>
    %132 = arith.mulf %130, %131 : vector<4x256xf32>
    %133 = arith.addf %127, %132 : vector<4x256xf32>
    %134 = vector.extract_strided_slice %122 {offsets = [0, 2], sizes = [4, 1], strides = [1, 1]} : vector<4x8xf32> to vector<4x1xf32>
    %135 = vector.extract_strided_slice %121 {offsets = [2, 0], sizes = [1, 256], strides = [1, 1]} : vector<8x256xf32> to vector<1x256xf32>
    %136 = vector.broadcast %134 : vector<4x1xf32> to vector<4x256xf32>
    %137 = vector.broadcast %135 : vector<1x256xf32> to vector<4x256xf32>
    %138 = arith.mulf %136, %137 : vector<4x256xf32>
    %139 = arith.addf %133, %138 : vector<4x256xf32>
    %140 = vector.extract_strided_slice %122 {offsets = [0, 3], sizes = [4, 1], strides = [1, 1]} : vector<4x8xf32> to vector<4x1xf32>
    %141 = vector.extract_strided_slice %121 {offsets = [3, 0], sizes = [1, 256], strides = [1, 1]} : vector<8x256xf32> to vector<1x256xf32>
    %142 = vector.broadcast %140 : vector<4x1xf32> to vector<4x256xf32>
    %143 = vector.broadcast %141 : vector<1x256xf32> to vector<4x256xf32>
    %144 = arith.mulf %142, %143 : vector<4x256xf32>
    %145 = arith.addf %139, %144 : vector<4x256xf32>
    %146 = vector.extract_strided_slice %122 {offsets = [0, 4], sizes = [4, 1], strides = [1, 1]} : vector<4x8xf32> to vector<4x1xf32>
    %147 = vector.extract_strided_slice %121 {offsets = [4, 0], sizes = [1, 256], strides = [1, 1]} : vector<8x256xf32> to vector<1x256xf32>
    %148 = vector.broadcast %146 : vector<4x1xf32> to vector<4x256xf32>
    %149 = vector.broadcast %147 : vector<1x256xf32> to vector<4x256xf32>
    %150 = arith.mulf %148, %149 : vector<4x256xf32>
    %151 = arith.addf %145, %150 : vector<4x256xf32>
    %152 = vector.extract_strided_slice %122 {offsets = [0, 5], sizes = [4, 1], strides = [1, 1]} : vector<4x8xf32> to vector<4x1xf32>
    %153 = vector.extract_strided_slice %121 {offsets = [5, 0], sizes = [1, 256], strides = [1, 1]} : vector<8x256xf32> to vector<1x256xf32>
    %154 = vector.broadcast %152 : vector<4x1xf32> to vector<4x256xf32>
    %155 = vector.broadcast %153 : vector<1x256xf32> to vector<4x256xf32>
    %156 = arith.mulf %154, %155 : vector<4x256xf32>
    %157 = arith.addf %151, %156 : vector<4x256xf32>
    %158 = vector.extract_strided_slice %122 {offsets = [0, 6], sizes = [4, 1], strides = [1, 1]} : vector<4x8xf32> to vector<4x1xf32>
    %159 = vector.extract_strided_slice %121 {offsets = [6, 0], sizes = [1, 256], strides = [1, 1]} : vector<8x256xf32> to vector<1x256xf32>
    %160 = vector.broadcast %158 : vector<4x1xf32> to vector<4x256xf32>
    %161 = vector.broadcast %159 : vector<1x256xf32> to vector<4x256xf32>
    %162 = arith.mulf %160, %161 : vector<4x256xf32>
    %163 = arith.addf %157, %162 : vector<4x256xf32>
    %164 = vector.extract_strided_slice %122 {offsets = [0, 7], sizes = [4, 1], strides = [1, 1]} : vector<4x8xf32> to vector<4x1xf32>
    %165 = vector.extract_strided_slice %121 {offsets = [7, 0], sizes = [1, 256], strides = [1, 1]} : vector<8x256xf32> to vector<1x256xf32>
    %166 = vector.broadcast %164 : vector<4x1xf32> to vector<4x256xf32>
    %167 = vector.broadcast %165 : vector<1x256xf32> to vector<4x256xf32>
    %168 = arith.mulf %166, %167 : vector<4x256xf32>
    %169 = arith.addf %163, %168 : vector<4x256xf32>
    %c0_36 = arith.constant 0 : index
    %c0_37 = arith.constant 0 : index
    %170 = vector.load %arg9[%c0_36, %c0_37] : memref<4x1xf32, #tpu.memory_space<vmem>>, vector<4x1xf32>
    %171 = vector.broadcast %170 : vector<4x1xf32> to vector<4x256xf32>
    %172 = arith.addf %169, %171 : vector<4x256xf32>
    %173 = arith.addf %172, %30 : vector<4x256xf32>
    %c0_38 = arith.constant 0 : index
    %c0_39 = arith.constant 0 : index
    %c0_40 = arith.constant 0 : index
    %174 = vector.load %arg10[%c0_38, %c0_39, %c0_40] : memref<1x4x256xf32, #tpu.memory_space<vmem>>, vector<1x4x256xf32>
    %175 = vector.shape_cast %174 : vector<1x4x256xf32> to vector<4x256xf32>
    %176 = vector.shape_cast %173 : vector<4x256xf32> to vector<1x4x256xf32>
    tpu.vector_store %arg10[%c0_38, %c0_39, %c0_40], %176 {strides = array<i32>} : memref<1x4x256xf32, #tpu.memory_space<vmem>>, vector<1x4x256xf32>,
    return
  }
  func.func @transform_0(%arg0: i32) -> (i32, i32, i32) {
    %c0_i32 = arith.constant 0 : i32
    %c0_i32_0 = arith.constant 0 : i32
    %c0_i32_1 = arith.constant 0 : i32
    return %arg0, %c0_i32, %c0_i32_0 : i32, i32, i32
  }
  func.func @transform_1(%arg0: i32) -> (i32, i32) {
    %c0_i32 = arith.constant 0 : i32
    %c0_i32_0 = arith.constant 0 : i32
    %c0_i32_1 = arith.constant 0 : i32
    return %c0_i32, %c0_i32_0 : i32, i32
  }
  func.func @transform_2(%arg0: i32) -> (i32, i32) {
    %c0_i32 = arith.constant 0 : i32
    %c0_i32_0 = arith.constant 0 : i32
    %c0_i32_1 = arith.constant 0 : i32
    return %c0_i32, %c0_i32_0 : i32, i32
  }
  func.func @transform_3(%arg0: i32) -> (i32, i32) {
    %c0_i32 = arith.constant 0 : i32
    %c0_i32_0 = arith.constant 0 : i32
    %c0_i32_1 = arith.constant 0 : i32
    return %c0_i32, %c0_i32_0 : i32, i32
  }
  func.func @transform_4(%arg0: i32) -> (i32, i32) {
    %c0_i32 = arith.constant 0 : i32
    %c0_i32_0 = arith.constant 0 : i32
    %c0_i32_1 = arith.constant 0 : i32
    return %c0_i32, %c0_i32_0 : i32, i32
  }
  func.func @transform_5(%arg0: i32) -> (i32, i32) {
    %c0_i32 = arith.constant 0 : i32
    %c0_i32_0 = arith.constant 0 : i32
    %c0_i32_1 = arith.constant 0 : i32
    return %c0_i32, %c0_i32_0 : i32, i32
  }
  func.func @transform_6(%arg0: i32) -> (i32, i32) {
    %c0_i32 = arith.constant 0 : i32
    %c0_i32_0 = arith.constant 0 : i32
    %c0_i32_1 = arith.constant 0 : i32
    return %c0_i32, %c0_i32_0 : i32, i32
  }
  func.func @transform_7(%arg0: i32) -> (i32, i32) {
    %c0_i32 = arith.constant 0 : i32
    %c0_i32_0 = arith.constant 0 : i32
    %c0_i32_1 = arith.constant 0 : i32
    return %c0_i32, %c0_i32_0 : i32, i32
  }
  func.func @transform_8(%arg0: i32) -> (i32, i32) {
    %c0_i32 = arith.constant 0 : i32
    %c0_i32_0 = arith.constant 0 : i32
    %c0_i32_1 = arith.constant 0 : i32
    return %c0_i32, %c0_i32_0 : i32, i32
  }
  func.func @transform_9(%arg0: i32) -> (i32, i32, i32) {
    %c0_i32 = arith.constant 0 : i32
    %c0_i32_0 = arith.constant 0 : i32
    %c0_i32_1 = arith.constant 0 : i32
    return %arg0, %c0_i32, %c0_i32_0 : i32, i32, i32
  }
}

</mosaic_0001>

<bundles_post_ra>
// kernel: squeeze.4
= control target key start
LH: loop header
LB: loop body
LE: loop exit
PB: predicated region body
PF: predicated region fallthrough
CT: control target
= control target key end

     0   :  { %vm16_vm0 = vcmask 64512   ;;  %s61_s0 = inlined_call_operand.vmem [shape: f32[8,3,3], index: 0, kind: input, shape index: {}]   ;;  %s62_s1 = inlined_call_operand.vmem [shape: f32[8,9], index: 1, kind: output, shape index: {}]  }
   0x1   :  { %v29_v0 = vld [vmem:[%s61_s0 + $0x8] sm:$0xf]  ;;  %v30_v1 = vld [vmem:[%s61_s0 + $0x4] sm:$0xf]  ;;  %v13_v2 = vld [vmem:[%s61_s0] sm:$0xf] }
   0x2   :  { %8 = vst [vmem:[#allocation0 + $0x10] sm:$0xf] %v29_v0  ;;  %12 = vst [vmem:[#allocation0 + $0x8] sm:$0xf] %v30_v1 }
   0x3   :  { %14 = vst [vmem:[#allocation0] sm:$0xf] %v13_v2 }
   0x9   :  { %v19_v4 = vld [vmem:[#allocation0 + $0x8] sm:$0x7]   ;;  %v24_v5 = vld [vmem:[#allocation0 + $0x10] sm:$0x7]  }
   0xa   :  { %v15_v3 = vld [vmem:[#allocation0] sm:$0x7]   ;;  %31 = vst.msk [vmem:[%s62_s1 + $0x3] sm:$0x7] %vm16_vm0, %v19_v4   ;;  %32 = vst.msk [vmem:[%s62_s1 + $0x6] sm:$0x7] %vm16_vm0, %v24_v5  }
   0xb   :  { %17 = vst.msk [vmem:[%s62_s1] sm:$0x7] %vm16_vm0, %v15_v3  }

// kernel: bottleneck_forward.1
= control target key start
LH: loop header
LB: loop body
LE: loop exit
PB: predicated region body
PF: predicated region fallthrough
CT: control target
= control target key end

     0   :  { %s1180_s30 = smov 0   ;;  %s1436_s0 = inlined_call_operand.vmem [shape: f32[2,4,256], index: 0, kind: input, shape index: {}]   ;;  %s1437_s1 = inlined_call_operand.vmem [shape: f32[8,4], index: 1, kind: input, shape index: {}]   ;;  %s1438_s2 = inlined_call_operand.vmem [shape: f32[8,1], index: 2, kind: input, shape index: {}]   ;;  %s1439_s3 = inlined_call_operand.vmem [shape: f32[8,1], index: 3, kind: input, shape index: {}]   ;;  %s1440_s4 = inlined_call_operand.vmem [shape: f32[8,9], index: 4, kind: input, shape index: {}]   ;;  %s1441_s5 = inlined_call_operand.vmem [shape: f32[8,1], index: 5, kind: input, shape index: {}]   ;;  %s1442_s6 = inlined_call_operand.vmem [shape: f32[8,1], index: 6, kind: input, shape index: {}]   ;;  %s1443_s7 = inlined_call_operand.vmem [shape: f32[4,8], index: 7, kind: input, shape index: {}]   ;;  %s1444_s8 = inlined_call_operand.vmem [shape: f32[4,1], index: 8, kind: input, shape index: {}]   ;;  %s1445_s9 = inlined_call_operand.vmem [shape: f32[2,4,256], index: 9, kind: output, shape index: {}]  }
   0x1 LB: > { %s1027_s10 = sadd.s32 4294967295, %s1111_s30   ;;  %p1031_p0 = scmp.ge.s32.totalorder %s1111_s30, 1  ;;  %s1111_s30 = sphi %s1180_s30, %s19_s30  }
   0x2   : > { %p287_p1 = scmp.lt.s32.totalorder %s1111_s30, 3 }
   0x4   : > { %p288_p2 = pnand %p1031_p0, %p287_p1 }
   0x5   : > { %v376_v0 = vld [vmem:[%s1437_s1] sm:$0xff] (!%p288_p2)  ;;  %v1113_v1 = vmov (!%p288_p2), 2   ;;  %v1114_v2 = vmov (!%p288_p2), 0   ;;  %v1115_v3 = vmov (!%p288_p2), 3   ;;  %v1116_v4 = vmov (!%p288_p2), 1   ;;  %p323_p3 = scmp.lt.s32.totalorder (!%p288_p2), %s1027_s10, 1 }
   0x6   : > { %291 = sbr.rel (%p288_p2) target bundleno = 574 (0x23e), region = 56  ;;  %1071 = vset.pattern.permute.xlu1 (!%p288_p2), %v1113_v1  ;;  %1069 = vset.pattern.permute.xlu0 (!%p288_p2), %v1114_v2  ;;  %v481_v5 = vld [vmem:[%s1438_s2] sm:$0xff] (!%p288_p2)  ;;  %v1117_v8 = vmov (!%p288_p2), 4   ;;  %v1118_v9 = vmov (!%p288_p2), 7   ;;  %v1119_v10 = vmov (!%p288_p2), 6   ;;  %v1120_v11 = vmov (!%p288_p2), 5  }
   0x7   : > { %430 = vperm.xlu1 (!%p288_p2), %1071, %v376_v0   ;;  %379 = vperm.xlu0 (!%p288_p2), %1069, %v376_v0   ;;  %v491_v6 = vld [vmem:[%s1439_s3] sm:$0xff] (!%p288_p2)  ;;  %v1121_v12 = vmov (!%p288_p2), 8   ;;  %v335_v13 = vlaneseq (!%p288_p2)  ;;  %s1122_s23 = smov (!%p288_p2), 96   ;;  %s1123_s24 = smov (!%p288_p2), 112   ;;  %vm530_vm6 = vcmask (!%p288_p2), 916480   ;;  %vm558_vm7 = vcmask (!%p288_p2), 785408  }
   0x8   : > { %v1206_v7 = vld [vmem:[%s1440_s4] sm:$0xff] (!%p288_p2)  ;;  %s1125_s25 = smov (!%p288_p2), 113   ;;  %s1126_s28 = smov (!%p288_p2), 111   ;;  %vm710_vm8 = vcmask (!%p288_p2), 924672   ;;  %vm640_vm9 = vcmask (!%p288_p2), 1039360   ;;  %vm573_vm10 = vcmask (!%p288_p2), 908288  }
   0x9   : > { %v384_v14 = vshrl.u32 (!%p288_p2), %v335_v13, 7  ;;  %s1127_s14 = smov (!%p288_p2), 127   ;;  %s1128_s15 = smov (!%p288_p2), 126   ;;  %vm727_vm11 = vcmask (!%p288_p2), 1031168   ;;  %vm966_vm15 = vcmask (!%p288_p2), 1043456  }
   0xa   : > { %s1129_s18 = smov (!%p288_p2), 17  }
   0xb   : > { %1072 = vset.pattern.permute.xlu1 (!%p288_p2), %v1115_v3  ;;  %1070 = vset.pattern.permute.xlu0 (!%p288_p2), %v1116_v4  ;;  %v1237_v15 = vsub.s32 (!%p288_p2), 0, %v384_v14  ;;  %v1239_v16 = vsub.s32 (!%p288_p2), 4, %v384_v14  ;;  %v1241_v17 = vsub.s32 (!%p288_p2), 1, %v384_v14  ;;  %v1243_v18 = vsub.s32 (!%p288_p2), 5, %v384_v14 }
   0xc   : > { %456 = vperm.xlu1 (!%p288_p2), %1072, %v376_v0   ;;  %404 = vperm.xlu0 (!%p288_p2), %1070, %v376_v0   ;;  %v1247_v20 = vsub.s32 (!%p288_p2), 2, %v384_v14  ;;  %v1249_v21 = vsub.s32 (!%p288_p2), 6, %v384_v14  ;;  %v1251_v22 = vsub.s32 (!%p288_p2), 3, %v384_v14  ;;  %v1253_v23 = vsub.s32 (!%p288_p2), 7, %v384_v14 }
   0xd   : > { %s1447_s10 = smov (!%p323_p3, %s1027_s10), 1 }
   0xe   : > { %s1042_s19 = sshll.u32 %s1447_s10, 3 }
   0xf   : > { %s327_s22 = scalar_lea.vmem %s1436_s0, %s1042_s19 }
  0x10   : > { %1073 = vset.pattern.permute.xlu1 %v1114_v2  ;;  %1074 = vset.pattern.permute.xlu0 %v1114_v2  ;;  %v1245_v19 = vld [vmem:[%s327_s22] sm:$0xff]  ;;  %s332_s22 = scalar_lea.vmem %s1445_s9, %s1042_s19 }
  0x11   : > { %484 = vperm.xlu1 %1073, %v481_v5   ;;  %494 = vperm.xlu0 %1074, %v491_v6   ;;  %v386_v24 = vrot.slane %v1245_v19, %v1237_v15  ;;  %v390_v25 = vrot.slane %v1245_v19, %v1239_v16  ;;  %v410_v26 = vrot.slane %v1245_v19, %v1241_v17  ;;  %v336_v6 = vand.u32 127, %v335_v13 }
  0x12   : > { %v414_v27 = vrot.slane %v1245_v19, %v1243_v18  ;;  %v436_v29 = vrot.slane %v1245_v19, %v1247_v20  ;;  %v440_v30 = vrot.slane %v1245_v19, %v1249_v21  ;;  %v462_v32 = vrot.slane %v1245_v19, %v1251_v22 }
  0x13   : > { %v466_v33 = vrot.slane %v1245_v19, %v1253_v23  ;;  %v396_v34 = vrot.slane %v386_v24, %v1237_v15  ;;  %v400_v35 = vrot.slane %v390_v25, %v1237_v15  ;;  %v420_v36 = vrot.slane %v410_v26, %v1241_v17 }
  0x14   : > { %v424_v37 = vrot.slane %v414_v27, %v1241_v17  ;;  %v446_v38 = vrot.slane %v436_v29, %v1247_v20  ;;  %v450_v39 = vrot.slane %v440_v30, %v1247_v20  ;;  %v472_v41 = vrot.slane %v462_v32, %v1251_v22 }
  0x15   : > { %1075 = vset.pattern.permute.xlu1 %v1117_v8  ;;  %1077 = vset.pattern.permute.xlu0 %v1118_v9  ;;  %v476_v42 = vrot.slane %v466_v33, %v1251_v22  ;;  %v337_v26 = vadd.s32 128, %v336_v6  ;;  %v342_v29 = vand.u32 15, %v336_v6 }
  0x16   : > { %608 = vperm.xlu0 %1077, %v1206_v7   ;;  %589 = vperm.xlu1 %1075, %v1206_v7  }
  0x17   : > { %v349_v30 = vand.u32 15, %v337_v26  ;;  %vm368_vm2 = vcmp.le.s32.totalorder %v342_v29, 14  ;;  %vm362_vm4 = vcmp.ge.s32.totalorder %v342_v29, 1 }
  0x19   : > { %vm369_vm3 = vcmp.le.s32.totalorder %v349_v30, 14  ;;  %vm363_vm5 = vcmp.ge.s32.totalorder %v349_v30, 1 }
  0x1a   : > { %1080 = vset.pattern.permute.xlu0 %v1119_v10  ;;  %1076 = vset.pattern.permute.xlu1 %v1120_v11 }
  0x1b   : > { %543 = vperm.xlu0 %1080, %v1206_v7   ;;  %657 = vperm.xlu1 %1076, %v1206_v7  }
  0x1f   : > { %1078 = vset.pattern.permute.xlu1 %v1121_v12  ;;  %1088 = vset.pattern.permute.xlu0 %v1114_v2 }
  0x20   : > { %681 = vperm.xlu1 %1078, %v1206_v7  }
  0x24   : > { %1079 = vset.pattern.permute.xlu1 %v1115_v3 }
  0x25   : > { %515 = vperm.xlu1 %1079, %v1206_v7  }
  0x29   : > { %1081 = vset.pattern.permute.xlu1 %v1116_v4 }
  0x2a   : > { %582 = vperm.xlu1 %1081, %v1206_v7  }
  0x2e   : > { %1082 = vset.pattern.permute.xlu1 %v1113_v1 }
  0x2f   : > { %650 = vperm.xlu1 %1082, %v1206_v7  }
  0x33   : > { %1094 = vset.pattern.permute.xlu1 %v1114_v2 }
  0x86   : > { %v431_v28 = vpop.permute.xlu1 %430  ;;  %v380_v31 = vpop.permute.xlu0 %379 }
  0x87   : > { %v401_v44 = vmul.f32 %v396_v34, %v380_v31  ;;  %v402_v45 = vmul.f32 %v400_v35, %v380_v31  ;;  %v451_v48 = vmul.f32 %v446_v38, %v431_v28  ;;  %v452_v49 = vmul.f32 %v450_v39, %v431_v28 }
  0x88   : > { %v1124_v35 = vmov 0.0  }
  0x8b   : > { %v457_v40 = vpop.permute.xlu1 %456  ;;  %v405_v43 = vpop.permute.xlu0 %404 }
  0x8c   : > { %v425_v46 = vmul.f32 %v420_v36, %v405_v43  ;;  %v426_v47 = vmul.f32 %v424_v37, %v405_v43  ;;  %v477_v52 = vmul.f32 %v472_v41, %v457_v40  ;;  %v478_v53 = vmul.f32 %v476_v42, %v457_v40 }
  0x8d   : > { %v1038_v36 = vsel %vm368_vm2, 1.0, %v1124_v35  ;;  %v1039_v37 = vsel %vm369_vm3, 1.0, %v1124_v35 }
  0x8e   : > { %v427_v50 = vadd.f32 %v425_v46, %v401_v44  ;;  %v428_v51 = vadd.f32 %v426_v47, %v402_v45  ;;  %v1083_v40 = vpack.i.bf16 %v1039_v37, %v1038_v36  ;;  %v1036_v47 = vsel %vm362_vm4, 1.0, %v1124_v35 }
  0x90   : > { %v485_v54 = vpop.permute.xlu1 %484  ;;  %v453_v55 = vadd.f32 %v451_v48, %v427_v50  ;;  %v454_v56 = vadd.f32 %v452_v49, %v428_v51  ;;  %v495_v57 = vpop.permute.xlu0 %494  ;;  %v1037_v48 = vsel %vm363_vm5, 1.0, %v1124_v35  ;;  %v736_v49 = vld [vmem:[%s1441_s5] sm:$0xff] }
  0x91   : > { %v1089_v50 = vpack.i.bf16 %v1037_v48, %v1036_v47  ;;  %v748_v51 = vld [vmem:[%s1442_s6] sm:$0xff] }
  0x92   : > { %v479_v58 = vadd.f32 %v477_v52, %v453_v55  ;;  %v480_v59 = vadd.f32 %v478_v53, %v454_v56 }
  0x94   : > { %v488_v60 = vadd.f32 %v485_v54, %v480_v59  ;;  %v487_v61 = vadd.f32 %v485_v54, %v479_v58 }
  0x95   : > { %v609_v62 = vpop.permute.xlu0 %608  ;;  %v590_v63 = vpop.permute.xlu1 %589 }
  0x96   : > { %vm490_vm0 = vcmp.ge.f32.partialorder %v488_v60, 0.0  ;;  %v498_v0 = vmul.f32 %v495_v57, %v488_v60  ;;  %v613_v5 = vmul.f32 0.0, %v609_v62  ;;  %v497_v14 = vmul.f32 %v495_v57, %v487_v61 }
  0x97   : > { %vm489_vm1 = vcmp.ge.f32.partialorder %v487_v61, 0.0 }
  0x98   : > { %v1279_v12 = vsel %vm490_vm0, %v488_v60, %v498_v0  ;;  %621 = vrot.lane.b32.xlu1 %v613_v5, %s1122_s23  ;;  %v1283_v28 = vsel %vm489_vm1, %v487_v61, %v497_v14  ;;  %vm968_vm0 = vcmask 138240  }
  0x99   : > { %v593_v24 = vmul.f32 %v590_v63, %v1279_v12  ;;  %v592_v31 = vmul.f32 %v590_v63, %v1283_v28  ;;  %v611_v32 = vmul.f32 %v609_v62, %v1283_v28  ;;  %v612_v39 = vmul.f32 %v609_v62, %v1279_v12 }
  0x9a   : > { %v658_v25 = vpop.permute.xlu1 %657  ;;  %v544_v44 = vpop.permute.xlu0 %543 }
  0x9b   : > { %v662_v27 = vmul.f32 0.0, %v658_v25  ;;  %v661_v13 = vmul.f32 %v658_v25, %v1279_v12  ;;  %v660_v33 = vmul.f32 %v658_v25, %v1283_v28  ;;  %v548_v46 = vmul.f32 0.0, %v544_v44 }
  0x9c   : > { %598 = vrot.lane.b32.xlu1 %v593_v24, %s1123_s24  ;;  %v547_v53 = vmul.f32 %v544_v44, %v1279_v12 }
  0x9d   : > { %670 = vrot.lane.b32.xlu0 %v662_v27, %s1123_s24 }
  0x9f   : > { %v682_v34 = vpop.permute.xlu1 %681 }
  0xa0   : > { %668 = vrot.lane.b32.xlu1 %v661_v13, %s1123_s24  ;;  %v685_v38 = vmul.f32 %v682_v34, %v1279_v12  ;;  %v684_v41 = vmul.f32 %v682_v34, %v1283_v28  ;;  %v686_v45 = vmul.f32 0.0, %v682_v34 }
  0xa1   : > { %596 = vrot.lane.b32.xlu0 %v592_v31, %s1123_s24 }
  0xa4   : > { %617 = vrot.lane.b32.xlu1 %v611_v32, %s1122_s23  ;;  %v516_v42 = vpop.permute.xlu1 %515 }
  0xa5   : > { %666 = vrot.lane.b32.xlu0 %v660_v33, %s1123_s24  ;;  %v518_v43 = vmul.f32 0.0, %v516_v42  ;;  %v520_v52 = vmul.f32 %v516_v42, %v1279_v12  ;;  %v519_v54 = vmul.f32 %v516_v42, %v1283_v28 }
  0xa8   : > { %692 = vrot.lane.b32.xlu1 %v685_v38, %s1122_s23 }
  0xa9   : > { %619 = vrot.lane.b32.xlu0 %v612_v39, %s1122_s23  ;;  %v583_v55 = vpop.permute.xlu1 %582 }
  0xaa   : > { %v585_v60 = vmul.f32 0.0, %v583_v55  ;;  %v587_v24 = vmul.f32 %v583_v55, %v1279_v12 }
  0xac   : > { %1084 = vrot.lane.b32.xlu1 %v1083_v40, %s1125_s25 }
  0xad   : > { %690 = vrot.lane.b32.xlu0 %v684_v41, %s1122_s23 }
  0xae   : > { %v651_v56 = vpop.permute.xlu1 %650 }
  0xaf   : > { %v653_v29 = vmul.f32 0.0, %v651_v56  ;;  %v654_v33 = vmul.f32 %v651_v56, %v1283_v28 }
  0xb0   : > { %524 = vrot.lane.b32.xlu1 %v518_v43, %s1123_s24 }
  0xb1   : > { %694 = vrot.lane.b32.xlu0 %v686_v45, %s1122_s23  ;;  %v655_v45 = vmul.f32 %v651_v56, %v1279_v12 }
  0xb4   : > { %556 = vrot.lane.b32.xlu1 %v548_v46, %s1122_s23 }
  0xb5   : > { %508 = vperm.xlu0 %1088, %v1206_v7   ;;  %v1318_v7 = vld [vmem:[%s1443_s7] sm:$0xf] }
  0xb8   : > { %739 = vperm.xlu1 %1094, %v736_v49  }
  0xb9   : > { %1090 = vrot.lane.b32.xlu0 %v1089_v50, %s1126_s28 }
  0xba   : > { %1095 = vset.pattern.permute.xlu0 %v1116_v4  ;;  %v546_v4 = vmul.f32 %v544_v44, %v1283_v28 }
  0xbc   : > { %751 = vperm.xlu1 %1094, %v748_v51  }
  0xbd   : > { %528 = vrot.lane.b32.xlu0 %v520_v52, %s1123_s24 }
  0xc0   : > { %763 = vperm.xlu1 %1094, %v1318_v7  }
  0xc1   : > { %554 = vrot.lane.b32.xlu0 %v547_v53, %s1122_s23 }
  0xc4   : > { %526 = vrot.lane.b32.xlu1 %v519_v54, %s1123_s24 }
  0xc5   : > { %1096 = vset.pattern.permute.xlu1 %v1113_v1  ;;  %v586_v1 = vmul.f32 %v583_v55, %v1283_v28 }
  0xc8   : > { %552 = vrot.lane.b32.xlu1 %v546_v4, %s1122_s23 }
 0x10a   : > { %v622_v57 = vpop.permute.xlu1 %621 }
 0x10e   : > { %v599_v58 = vpop.permute.xlu1 %598 }
 0x10f   : > { %v671_v59 = vpop.permute.xlu0 %670  ;;  %v606_v26 = vadd.f32 %v599_v58, %v587_v24 }
 0x112   : > { %v669_v61 = vpop.permute.xlu1 %668 }
 0x113   : > { %v597_v62 = vpop.permute.xlu0 %596  ;;  %v673_v42 = vsel %vm530_vm6, %v669_v61, %v671_v59 }
 0x114   : > { %v604_v63 = vadd.f32 %v597_v62, %v585_v60  ;;  %v600_v14 = vsel %vm530_vm6, %v597_v62, %v599_v58  ;;  %v679_v49 = vadd.f32 %v673_v42, %v655_v45 }
 0x115   : > { %v605_v27 = vadd.f32 %v600_v14, %v586_v1 }
 0x116   : > { %v618_v0 = vpop.permute.xlu1 %617 }
 0x117   : > { %v628_v5 = vadd.f32 %v618_v0, %v604_v63  ;;  %v667_v6 = vpop.permute.xlu0 %666 }
 0x118   : > { %v672_v30 = vsel %vm530_vm6, %v667_v6, %v669_v61  ;;  %v677_v36 = vadd.f32 %v667_v6, %v653_v29 }
 0x119   : > { %634 = vrot.lane.b32.xlu0 %v628_v5, %s1127_s14  ;;  %v678_v38 = vadd.f32 %v672_v30, %v654_v33 }
 0x11a   : > { %v693_v25 = vpop.permute.xlu1 %692 }
 0x11b   : > { %v620_v13 = vpop.permute.xlu0 %619 }
 0x11c   : > { %v623_v31 = vsel %vm558_vm7, %v618_v0, %v620_v13  ;;  %v624_v32 = vsel %vm558_vm7, %v620_v13, %v622_v57 }
 0x11d   : > { %v629_v34 = vadd.f32 %v623_v31, %v605_v27  ;;  %v630_v35 = vadd.f32 %v624_v32, %v606_v26 }
 0x11e   : > { %v1085_v37 = vpop.permute.xlu1 %1084 }
 0x11f   : > { %v1087_v39 = vunpack.i.h.bf16 %v1085_v37  ;;  %v1086_v40 = vunpack.i.l.bf16 %v1085_v37  ;;  %638 = vrot.lane.b32.xlu0 %v630_v35, %s1127_s14  ;;  %v691_v41 = vpop.permute.xlu0 %690  ;;  %636 = vrot.lane.b32.xlu1 %v629_v34, %s1127_s14 }
 0x120   : > { %v696_v43 = vsel %vm558_vm7, %v691_v41, %v693_v25  ;;  %v701_v44 = vadd.f32 %v691_v41, %v677_v36 }
 0x121   : > { %v702_v46 = vadd.f32 %v696_v43, %v678_v38  ;;  %v711_v47 = vsel %vm710_vm8, %v1086_v40, %v1087_v39 }
 0x122   : > { %v715_v48 = vmul.f32 %v1086_v40, %v701_v44  ;;  %v525_v4 = vpop.permute.xlu1 %524 }
 0x123   : > { %v695_v50 = vpop.permute.xlu0 %694  ;;  %v716_v51 = vmul.f32 %v711_v47, %v702_v46 }
 0x124   : > { %v697_v52 = vsel %vm558_vm7, %v693_v25, %v695_v50  ;;  %721 = vrot.lane.b32.xlu0 %v715_v48, %s1128_s15 }
 0x125   : > { %v703_v53 = vadd.f32 %v697_v52, %v679_v49  ;;  %723 = vrot.lane.b32.xlu1 %v716_v51, %s1128_s15 }
 0x126   : > { %v557_v55 = vpop.permute.xlu1 %556 }
 0x127   : > { %v717_v54 = vmul.f32 %v1087_v39, %v703_v53 }
 0x129   : > { %725 = vrot.lane.b32.xlu0 %v717_v54, %s1128_s15  ;;  %804 = vperm.xlu1 %1096, %v1318_v7  }
 0x12d   : > { %782 = vperm.xlu0 %1095, %v1318_v7   ;;  %1097 = vset.pattern.permute.xlu1 %v1115_v3  ;;  %v944_v3 = vcombine.high %v1245_v19, %v1245_v19 }
 0x12e   : > { %826 = vperm.xlu1 %1097, %v1318_v7  }
 0x131   : > { %1098 = vset.pattern.permute.xlu0 %v1117_v8  ;;  %v935_v8 = vld [vmem:[%s1444_s8] sm:$0xf] }
 0x132   : > { %848 = vperm.xlu0 %1098, %v1318_v7   ;;  %1099 = vset.pattern.permute.xlu1 %v1120_v11 }
 0x133   : > { %870 = vperm.xlu1 %1099, %v1318_v7  }
 0x134   : > { %v509_v56 = vpop.permute.xlu0 %508 }
 0x135   : > { %v512_v60 = vmul.f32 %v509_v56, %v1283_v28  ;;  %v511_v6 = vmul.f32 0.0, %v509_v56  ;;  %v513_v24 = vmul.f32 %v509_v56, %v1279_v12 }
 0x136   : > { %1101 = vset.pattern.permute.xlu0 %v1118_v9 }
 0x137   : > { %v740_v57 = vpop.permute.xlu1 %739  ;;  %914 = vperm.xlu0 %1101, %v1318_v7   ;;  %1100 = vset.pattern.permute.xlu1 %v1119_v10 }
 0x138   : > { %892 = vperm.xlu1 %1100, %v1318_v7   ;;  %v1091_v11 = vpop.permute.xlu0 %1090 }
 0x139   : > { %v1092_v25 = vunpack.i.l.bf16 %v1091_v11  ;;  %v1093_v29 = vunpack.i.h.bf16 %v1091_v11 }
 0x13b   : > { %v752_v58 = vpop.permute.xlu1 %751  ;;  %947 = vrot.lane.b32.xlu0 %v944_v3, %s1126_s28  ;;  %v574_v33 = vsel %vm573_vm10, %v1092_v25, %v1093_v29 }
 0x13c   : > { %1102 = vset.pattern.permute.xlu1 %v1114_v2  ;;  %1103 = vset.pattern.permute.xlu0 %v1114_v2  ;;  %v529_v10 = vpop.permute.xlu0 %528 }
 0x13d   : > { %938 = vperm.xlu1 %1102, %v935_v8   ;;  %v538_v13 = vadd.f32 %v529_v10, %v513_v24 }
 0x13f   : > { %v1359_v9 = vpop.permute.xlu1 %763 }
 0x140   : > { %v555_v61 = vpop.permute.xlu0 %554 }
 0x141   : > { %945 = vrot.lane.b32.xlu1 %v1245_v19, %s1126_s28  ;;  %v560_v19 = vsel %vm558_vm7, %v555_v61, %v557_v55 }
 0x142   : > { %v566_v30 = vadd.f32 %v560_v19, %v538_v13 }
 0x143   : > { %v527_v7 = vpop.permute.xlu1 %526 }
 0x144   : > { %v532_v59 = vsel %vm530_vm6, %v527_v7, %v529_v10  ;;  %v531_v2 = vsel %vm530_vm6, %v525_v4, %v527_v7  ;;  %v580_v12 = vmul.f32 %v1093_v29, %v566_v30 }
 0x145   : > { %v537_v62 = vadd.f32 %v532_v59, %v512_v60  ;;  %v536_v14 = vadd.f32 %v531_v2, %v511_v6 }
 0x147   : > { %v553_v63 = vpop.permute.xlu1 %552 }
 0x148   : > { %v559_v0 = vsel %vm558_vm7, %v553_v63, %v555_v61  ;;  %v564_v26 = vadd.f32 %v553_v63, %v536_v14 }
 0x149   : > { %v565_v5 = vadd.f32 %v559_v0, %v537_v62 }
 0x14a   : > { %v578_v32 = vmul.f32 %v1092_v25, %v564_v26 }
 0x14b   : > { %v579_v39 = vmul.f32 %v574_v33, %v565_v5 }
 0x18b   : > { %v635_v1 = vpop.permute.xlu0 %634 }
 0x191   : > { %v639_v27 = vpop.permute.xlu0 %638  ;;  %v637_v28 = vpop.permute.xlu1 %636 }
 0x192   : > { %v641_v31 = vsel %vm640_vm9, %v635_v1, %v637_v28  ;;  %v642_v37 = vsel %vm640_vm9, %v637_v28, %v639_v27  ;;  %v648_v41 = vadd.f32 %v639_v27, %v580_v12 }
 0x193   : > { %v646_v35 = vadd.f32 %v641_v31, %v578_v32  ;;  %v647_v42 = vadd.f32 %v642_v37, %v579_v39 }
 0x196   : > { %v722_v34 = vpop.permute.xlu0 %721 }
 0x197   : > { %v724_v36 = vpop.permute.xlu1 %723 }
 0x198   : > { %v728_v38 = vsel %vm727_vm11, %v722_v34, %v724_v36 }
 0x199   : > { %v733_v40 = vadd.f32 %v728_v38, %v646_v35 }
 0x19b   : > { %v726_v43 = vpop.permute.xlu0 %725  ;;  %v742_v44 = vadd.f32 %v740_v57, %v733_v40 }
 0x19c   : > { %v729_v45 = vsel %vm727_vm11, %v724_v36, %v726_v43  ;;  %v735_v46 = vadd.f32 %v726_v43, %v648_v41 }
 0x19d   : > { %v734_v47 = vadd.f32 %v729_v45, %v647_v42  ;;  %v754_v50 = vmul.f32 %v752_v58, %v742_v44  ;;  %vm745_vm12 = vcmp.ge.f32.partialorder %v742_v44, 0.0 }
 0x19e   : > { %v744_v48 = vadd.f32 %v740_v57, %v735_v46 }
 0x19f   : > { %v743_v49 = vadd.f32 %v740_v57, %v734_v47  ;;  %v1370_v53 = vsel %vm745_vm12, %v742_v44, %v754_v50 }
 0x1a0   : > { %v756_v51 = vmul.f32 %v752_v58, %v744_v48  ;;  %vm747_vm13 = vcmp.ge.f32.partialorder %v744_v48, 0.0  ;;  %v769_v55 = vrot.slane %v1370_v53, %v1237_v15  ;;  %v810_v8 = vrot.slane %v1370_v53, %v1247_v20 }
 0x1a1   : > { %v755_v52 = vmul.f32 %v752_v58, %v743_v49  ;;  %vm746_vm14 = vcmp.ge.f32.partialorder %v743_v49, 0.0  ;;  %v788_v11 = vrot.slane %v1370_v53, %v1241_v17  ;;  %v832_v58 = vrot.slane %v1370_v53, %v1251_v22 }
 0x1a2   : > { %v1372_v54 = vsel %vm747_vm13, %v744_v48, %v756_v51  ;;  %v778_v10 = vmul.f32 %v769_v55, %v1359_v9  ;;  %v876_v0 = vrot.slane %v1370_v53, %v1243_v18  ;;  %v898_v48 = vrot.slane %v1370_v53, %v1249_v21 }
 0x1a3   : > { %v1374_v4 = vsel %vm746_vm14, %v743_v49, %v755_v52  ;;  %v777_v3 = vrot.slane %v1372_v54, %v1237_v15  ;;  %v796_v59 = vrot.slane %v1372_v54, %v1241_v17  ;;  %v818_v61 = vrot.slane %v1372_v54, %v1247_v20 }
 0x1a4   : > { %v773_v57 = vrot.slane %v1374_v4, %v1237_v15  ;;  %v792_v7 = vrot.slane %v1374_v4, %v1241_v17  ;;  %v854_v15 = vrot.slane %v1370_v53, %v1239_v16  ;;  %v814_v60 = vrot.slane %v1374_v4, %v1247_v20 }
 0x1a5   : > { %v780_v63 = vmul.f32 %v777_v3, %v1359_v9  ;;  %v836_v25 = vrot.slane %v1374_v4, %v1251_v22  ;;  %v840_v20 = vrot.slane %v1372_v54, %v1251_v22  ;;  %v862_v30 = vrot.slane %v1372_v54, %v1239_v16 }
 0x1a6   : > { %v779_v5 = vmul.f32 %v773_v57, %v1359_v9  ;;  %v858_v9 = vrot.slane %v1374_v4, %v1239_v16  ;;  %v880_v37 = vrot.slane %v1374_v4, %v1243_v18  ;;  %v884_v42 = vrot.slane %v1372_v54, %v1243_v18 }
 0x1a7   : > { %v902_v49 = vrot.slane %v1374_v4, %v1249_v21  ;;  %v920_v3 = vrot.slane %v1370_v53, %v1253_v23  ;;  %v924_v57 = vrot.slane %v1374_v4, %v1253_v23 }
 0x1a8   : > { %v805_v56 = vpop.permute.xlu1 %804 }
 0x1a9   : > { %v819_v1 = vmul.f32 %v810_v8, %v805_v56  ;;  %v820_v24 = vmul.f32 %v814_v60, %v805_v56  ;;  %v821_v19 = vmul.f32 %v818_v61, %v805_v56  ;;  %v906_v56 = vrot.slane %v1372_v54, %v1249_v21 }
 0x1ac   : > { %v783_v62 = vpop.permute.xlu0 %782 }
 0x1ad   : > { %v797_v6 = vmul.f32 %v788_v11, %v783_v62  ;;  %v798_v2 = vmul.f32 %v792_v7, %v783_v62  ;;  %v799_v17 = vmul.f32 %v796_v59, %v783_v62  ;;  %v827_v14 = vpop.permute.xlu1 %826 }
 0x1ae   : > { %v841_v13 = vmul.f32 %v832_v58, %v827_v14  ;;  %v842_v29 = vmul.f32 %v836_v25, %v827_v14  ;;  %v843_v34 = vmul.f32 %v840_v20, %v827_v14  ;;  %v928_v58 = vrot.slane %v1372_v54, %v1253_v23 }
 0x1af   : > { %v800_v26 = vadd.f32 %v797_v6, %v778_v10  ;;  %v801_v27 = vadd.f32 %v798_v2, %v779_v5  ;;  %v802_v28 = vadd.f32 %v799_v17, %v780_v63 }
 0x1b1   : > { %v822_v31 = vadd.f32 %v819_v1, %v800_v26  ;;  %v823_v32 = vadd.f32 %v820_v24, %v801_v27  ;;  %v824_v33 = vadd.f32 %v821_v19, %v802_v28  ;;  %v849_v35 = vpop.permute.xlu0 %848 }
 0x1b2   : > { %v863_v36 = vmul.f32 %v854_v15, %v849_v35  ;;  %v864_v12 = vmul.f32 %v858_v9, %v849_v35  ;;  %v865_v22 = vmul.f32 %v862_v30, %v849_v35  ;;  %v871_v38 = vpop.permute.xlu1 %870 }
 0x1b3   : > { %v844_v39 = vadd.f32 %v841_v13, %v822_v31  ;;  %v845_v40 = vadd.f32 %v842_v29, %v823_v32  ;;  %v846_v41 = vadd.f32 %v843_v34, %v824_v33  ;;  %v885_v43 = vmul.f32 %v876_v0, %v871_v38 }
 0x1b4   : > { %v886_v16 = vmul.f32 %v880_v37, %v871_v38  ;;  %v887_v47 = vmul.f32 %v884_v42, %v871_v38 }
 0x1b5   : > { %v866_v44 = vadd.f32 %v863_v36, %v844_v39  ;;  %v867_v45 = vadd.f32 %v864_v12, %v845_v40  ;;  %v868_v46 = vadd.f32 %v865_v22, %v846_v41 }
 0x1b6   : > { %v915_v55 = vpop.permute.xlu0 %914 }
 0x1b7   : > { %v888_v50 = vadd.f32 %v885_v43, %v866_v44  ;;  %v889_v51 = vadd.f32 %v886_v16, %v867_v45  ;;  %v890_v52 = vadd.f32 %v887_v47, %v868_v46  ;;  %v893_v18 = vpop.permute.xlu1 %892  ;;  %v929_v7 = vmul.f32 %v920_v3, %v915_v55 }
 0x1b8   : > { %v907_v8 = vmul.f32 %v898_v48, %v893_v18  ;;  %v908_v11 = vmul.f32 %v902_v49, %v893_v18  ;;  %v909_v10 = vmul.f32 %v906_v56, %v893_v18  ;;  %v930_v59 = vmul.f32 %v924_v57, %v915_v55 }
 0x1b9   : > { %v931_v61 = vmul.f32 %v928_v58, %v915_v55 }
 0x1ba   : > { %v910_v15 = vadd.f32 %v907_v8, %v888_v50  ;;  %v911_v60 = vadd.f32 %v908_v11, %v889_v51  ;;  %v912_v62 = vadd.f32 %v909_v10, %v890_v52  ;;  %v948_v6 = vpop.permute.xlu0 %947 }
 0x1bc   : > { %v932_v21 = vadd.f32 %v929_v7, %v910_v15  ;;  %v933_v63 = vadd.f32 %v930_v59, %v911_v60  ;;  %v939_v0 = vpop.permute.xlu1 %938  ;;  %v934_v5 = vadd.f32 %v931_v61, %v912_v62 }
 0x1be   : > { %v941_v53 = vadd.f32 %v939_v0, %v932_v21  ;;  %v943_v2 = vadd.f32 %v939_v0, %v934_v5  ;;  %v942_v4 = vadd.f32 %v939_v0, %v933_v63 }
 0x1c0   : > { %v946_v17 = vpop.permute.xlu1 %945  ;;  %v955_v14 = vadd.f32 %v948_v6, %v943_v2 }
 0x1c1   : > { %v949_v23 = vsel %vm573_vm10, %v946_v17, %v948_v6  ;;  %v953_v54 = vadd.f32 %v946_v17, %v941_v53 }
 0x1c2   : > { %v954_v1 = vadd.f32 %v949_v23, %v942_v4  ;;  %962 = vrot.lane.b32.xlu0 %v955_v14, %s1129_s18 }
 0x1c4   : > { %v959_v24 = vcombine.low %v953_v54, %v954_v1 }
 0x1c6   : > { %960 = vrot.lane.b32.xlu1 %v959_v24, %s1129_s18 }
 0x234   : > { %v963_v25 = vpop.permute.xlu0 %962 }
 0x235   : > { %v965_v19 = vrot.slane %v963_v25, 4 }
 0x238   : > { %v961_v20 = vpop.permute.xlu1 %960 }
 0x239   : > { %v964_v26 = vrot.slane %v961_v20, 4 }
 0x23b   : > { %v967_v27 = vsel %vm966_vm15, %v964_v26, %v965_v19 }
 0x23c   : > { %v969_v28 = vsel %vm968_vm0, %v961_v20, %v967_v27 }
 0x23d   : > { %971 = vst [vmem:[%s332_s22] sm:$0xff] %v969_v28 }
 0x23e PF: > { %s19_s30 = sadd.s32 1, %s1111_s30  }
 0x23f   : > { %p16_p4 = scmp.ge.s32.totalorder %s19_s30, 4  }
 0x241   :  { %18 = sbr.rel (!%p16_p4) target bundleno = 1 (0x1), region = 86 }

</bundles_post_ra>
